<compile_context>
chip_gen: v7x
topology: tpu7x:2x2x1
jax: 0.10.0
libtpu: 0.0.40
codegen_flags: <defaults>
</compile_context>

<pallas_src>
import jax
import jax.numpy as jnp
from jax import lax
from jax.experimental import pallas as pl
from jax.experimental.pallas import tpu as pltpu


def two_layer_kernel(x_ref, w1_ref, b1_ref, w2_ref, b2_ref, o_ref):
    # linear1: x (N, Din) contracted with w1 (H, Din) on Din -> (N, H).  Torch layout,
    # no transpose needed: dot_general contracts x dim 1 with w1 dim 1 on the MXU.
    h = lax.dot_general(
        x_ref[...], w1_ref[...],
        dimension_numbers=(((1,), (1,)), ((), ())),
        preferred_element_type=jnp.float32,
    )
    h_relu = jnp.maximum(h + b1_ref[...], 0.0)          # bias add + clamp(min=0) on VPU

    # linear2: h_relu (N, H) contracted with w2 (Dout, H) on H -> (N, Dout).
    y = lax.dot_general(
        h_relu.astype(w2_ref.dtype), w2_ref[...],        # no-op cast for f32 weights
        dimension_numbers=(((1,), (1,)), ((), ())),
        preferred_element_type=jnp.float32,
    )
    o_ref[...] = (y + b2_ref[...]).astype(o_ref.dtype)


def _round_up(n, m):
    return ((n + m - 1) // m) * m


def make_two_layer_net(w1, b1, w2, b2):
    """Build the forward fn once from torch-layout params.

    w1: (H, D_in), b1: (H,), w2: (D_out, H), b2: (D_out,).
    Weight padding / layout prep happens here (init time), never per call.
    Returns fwd(x: (N, D_in)) -> (N, D_out).
    """
    H, D_in = w1.shape
    D_out = w2.shape[0]

    D_in_p = _round_up(D_in, 128)
    H_p = _round_up(H, 128)
    D_out_p = _round_up(D_out, 128)

    # Zero-padding keeps the math exact: padded contraction columns multiply zeros,
    # padded output columns/rows are sliced off below.
    w1_p = jnp.pad(w1, ((0, H_p - H), (0, D_in_p - D_in)))
    b1_p = jnp.pad(b1, (0, H_p - H)).reshape(1, H_p)
    w2_p = jnp.pad(w2, ((0, D_out_p - D_out), (0, H_p - H)))
    b2_p = jnp.pad(b2, (0, D_out_p - D_out)).reshape(1, D_out_p)

    vmem_spec = pl.BlockSpec(memory_space=pltpu.MemorySpace.VMEM)

    def fwd(x):
        N = x.shape[0]
        N_p = _round_up(N, 8)
        x_p = jnp.pad(x, ((0, N_p - N), (0, D_in_p - D_in)))

        y_p = pl.pallas_call(
            two_layer_kernel,
            out_shape=jax.ShapeDtypeStruct((N_p, D_out_p), x.dtype),
            in_specs=[vmem_spec] * 5,
            out_specs=vmem_spec,
        )(x_p, w1_p, b1_p, w2_p, b2_p)

        return y_p[:N, :D_out]

    return jax.jit(fwd)


if __name__ == "__main__":
    # Small shapes consistent with TwoLayerNet(D_in, H, D_out) applied to x of shape (N, D_in).
    N, D_in, H, D_out = 8, 32, 64, 16

    key = jax.random.PRNGKey(0)
    kx, kw1, kb1, kw2, kb2 = jax.random.split(key, 5)

    x = jax.random.normal(kx, (N, D_in), dtype=jnp.float32)
    # Deterministic "nn.Linear"-style init (uniform in +-1/sqrt(fan_in)).
    w1 = jax.random.uniform(kw1, (H, D_in), jnp.float32, -1.0, 1.0) / jnp.sqrt(D_in)
    b1 = jax.random.uniform(kb1, (H,), jnp.float32, -1.0, 1.0) / jnp.sqrt(D_in)
    w2 = jax.random.uniform(kw2, (D_out, H), jnp.float32, -1.0, 1.0) / jnp.sqrt(H)
    b2 = jax.random.uniform(kb2, (D_out,), jnp.float32, -1.0, 1.0) / jnp.sqrt(H)

    net = make_two_layer_net(w1, b1, w2, b2)
    y = net(x)
    jax.block_until_ready(y)

    # Pure-JAX reference check of the forward semantics.
    h_ref = jnp.maximum(x @ w1.T + b1, 0.0)
    y_ref = h_ref @ w2.T + b2
    assert y.shape == (N, D_out)
    assert jnp.allclose(y, y_ref, atol=1e-5, rtol=1e-5)

    print("KERNEL_OK")
</pallas_src>

<mosaic_0001>
module attributes {stable_mosaic.version = 11 : i64} {
  func.func @two_layer_kernel(%arg0: memref<8x128xf32, #tpu.memory_space<vmem>>, %arg1: memref<128x128xf32, #tpu.memory_space<vmem>>, %arg2: memref<1x128xf32, #tpu.memory_space<vmem>>, %arg3: memref<128x128xf32, #tpu.memory_space<vmem>>, %arg4: memref<1x128xf32, #tpu.memory_space<vmem>>, %arg5: memref<8x128xf32, #tpu.memory_space<vmem>>) attributes {dimension_semantics = [], scalar_prefetch = 0 : i64, scratch_operands = 0 : i64, tpu.core_type = #tpu.core_type<tc>} {
    %c0 = arith.constant 0 : index
    %c0_0 = arith.constant 0 : index
    %0 = vector.load %arg0[%c0, %c0_0] : memref<8x128xf32, #tpu.memory_space<vmem>>, vector<8x128xf32>
    %c0_1 = arith.constant 0 : index
    %c0_2 = arith.constant 0 : index
    %1 = vector.load %arg1[%c0_1, %c0_2] : memref<128x128xf32, #tpu.memory_space<vmem>>, vector<128x128xf32>
    %cst = arith.constant dense<0.000000e+00> : vector<8x128xf32>
    %2 = tpu.matmul %0, %1, %cst {dimension_numbers = #tpu.dot_dimension_numbers<[1], [1], [0], [0], [0, 0, 1, 0], [], []>} : vector<8x128xf32>, vector<128x128xf32>, vector<8x128xf32> -> vector<8x128xf32>
    %c0_3 = arith.constant 0 : index
    %c0_4 = arith.constant 0 : index
    %3 = vector.load %arg2[%c0_3, %c0_4] : memref<1x128xf32, #tpu.memory_space<vmem>>, vector<1x128xf32>
    %4 = vector.broadcast %3 : vector<1x128xf32> to vector<8x128xf32>
    %5 = arith.addf %2, %4 : vector<8x128xf32>
    %cst_5 = arith.constant 0.000000e+00 : f32
    %6 = vector.broadcast %cst_5 : f32 to vector<8x128xf32>
    %7 = arith.maximumf %5, %6 : vector<8x128xf32>
    %c0_6 = arith.constant 0 : index
    %c0_7 = arith.constant 0 : index
    %8 = vector.load %arg3[%c0_6, %c0_7] : memref<128x128xf32, #tpu.memory_space<vmem>>, vector<128x128xf32>
    %cst_8 = arith.constant dense<0.000000e+00> : vector<8x128xf32>
    %9 = tpu.matmul %7, %8, %cst_8 {dimension_numbers = #tpu.dot_dimension_numbers<[1], [1], [0], [0], [0, 0, 1, 0], [], []>} : vector<8x128xf32>, vector<128x128xf32>, vector<8x128xf32> -> vector<8x128xf32>
    %c0_9 = arith.constant 0 : index
    %c0_10 = arith.constant 0 : index
    %10 = vector.load %arg4[%c0_9, %c0_10] : memref<1x128xf32, #tpu.memory_space<vmem>>, vector<1x128xf32>
    %11 = vector.broadcast %10 : vector<1x128xf32> to vector<8x128xf32>
    %12 = arith.addf %9, %11 : vector<8x128xf32>
    %c0_11 = arith.constant 0 : index
    %c0_12 = arith.constant 0 : index
    %13 = vector.load %arg5[%c0_11, %c0_12] : memref<8x128xf32, #tpu.memory_space<vmem>>, vector<8x128xf32>
    tpu.vector_store %arg5[%c0_11, %c0_12], %12 {strides = array<i32>} : memref<8x128xf32, #tpu.memory_space<vmem>>, vector<8x128xf32>,
    return
  }
}

</mosaic_0001>

<bundles_post_ra>
// kernel: fwd.1
= control target key start
LH: loop header
LB: loop body
LE: loop exit
PB: predicated region body
PF: predicated region fallthrough
CT: control target
= control target key end

     0   :  { %10 = vsyncpa [#allocation3], 0  ;;  %s587_s0 = inlined_call_operand.vmem [shape: f32[8,128], index: 0, kind: input, shape index: {}]   ;;  %s588_s1 = inlined_call_operand.hbm [shape: f32[128,128], index: 1, kind: input, shape index: {}]   ;;  %s589_s2 = inlined_call_operand.vmem [shape: f32[1,128], index: 2, kind: input, shape index: {}]   ;;  %s590_s3 = inlined_call_operand.hbm [shape: f32[128,128], index: 3, kind: input, shape index: {}]   ;;  %s591_s4 = inlined_call_operand.vmem [shape: f32[1,128], index: 4, kind: input, shape index: {}]   ;;  %s592_s5 = inlined_call_operand.hbm [shape: f32[8,128], index: 5, kind: output, shape index: {}]  }
   0x1   :  { %11 = vsyncpa [#allocation6], 0 }
   0x2   :  { %12 = vsyncpa [#allocation4], 0  ;;  %s488_s18 = smov [#allocation2]   ;;  %s416_s22 = scalar_lea.hbm %s588_s1, 2048 }
   0x3   :  { %s20_s19 = sshll.u32 %s488_s18, 4  ;;  %p417_p0 = scmp.ne.s32.totalorder %s588_s1, %s416_s22  ;;  %s21_s19 = int_to_ptr.vmem [resolvable:$true] %s20_s19 }
   0x4   :  { %p420_p1 = scmp.lt.u32.totalorder %s416_s22, %s588_s1 }
   0x6   :  { %p422_p2 = pnand %p420_p1, %p417_p0 }
   0x8   :  { %425 = shalt.err (!%p422_p2)
}
   0x9   :  { %s426_s27 = scalar_lea.vmem %s21_s19, 2048  ;;  %p431_p4 = scmp.lt.s32.totalorder %s21_s19, %s21_s19 }
   0xa   :  { %p427_p3 = scmp.ne.s32.totalorder %s21_s19, %s426_s27  ;;  %p432_p5 = scmp.lt.s32.totalorder %s426_s27, %s426_s27 }
   0xc   :  { %p433_p6 = por %p432_p5, %p431_p4 }
   0xe   :  { %p434_p7 = pnand %p433_p6, %p427_p3 }
  0x10   :  { %437 = shalt.err (!%p434_p7)
}
  0x11   :  { %s489_s28 = smov 128   ;;  %s490_s29 = smov 8  }
  0x12   :  { %26 = dma.hbm_to_vmem [thread:$0]  %s588_s1, 2048, %s21_s19, [#allocation3], %s489_s28, %s489_s28, %s490_s29  }
  0x13   :  { %s491_s7 = smov [#allocation5]   ;;  %s438_s11 = scalar_lea.hbm %s590_s3, 2048 }
  0x14   :  { %s34_s8 = sshll.u32 %s491_s7, 4  ;;  %p439_p8 = scmp.ne.s32.totalorder %s590_s3, %s438_s11  ;;  %s35_s8 = int_to_ptr.vmem [resolvable:$true] %s34_s8 }
  0x15   :  { %p442_p9 = scmp.lt.u32.totalorder %s438_s11, %s590_s3 }
  0x17   :  { %p444_p10 = pnand %p442_p9, %p439_p8 }
  0x19   :  { %447 = shalt.err (!%p444_p10)
}
  0x1a   :  { %s448_s16 = scalar_lea.vmem %s35_s8, 2048  ;;  %p453_p12 = scmp.lt.s32.totalorder %s35_s8, %s35_s8 }
  0x1b   :  { %p449_p11 = scmp.ne.s32.totalorder %s35_s8, %s448_s16  ;;  %p454_p13 = scmp.lt.s32.totalorder %s448_s16, %s448_s16 }
  0x1d   :  { %p455_p0 = por %p454_p13, %p453_p12 }
  0x1f   :  { %p456_p1 = pnand %p455_p0, %p449_p11 }
  0x21   :  { %459 = shalt.err (!%p456_p1)
}
  0x22   :  { %40 = dma.hbm_to_vmem [thread:$0]  %s590_s3, 2048, %s35_s8, [#allocation6], %s489_s28, %s489_s28, %s490_s29  }
  0x23   :  { %482 = dma.done.wait [#allocation3], 2048  }
  0x24   :  { %483 = vsyncadd [#allocation3], 4294965248 }
  0x25   :  { %484 = dma.done.wait [#allocation6], 2048  }
  0x26   :  { %485 = vsyncadd [#allocation6], 4294965248  ;;  %v492_v0 = vmov 0.0|0.0   ;;  %vm493_vm0 = vmmov 0   ;;  %v494_v1 = vmov 0.0   ;;  %v50_v2 = vld [vmem:[#allocation2] sm:$0xff] }
  0x27   :  { %360 = vmatprep.subr.bf16.mxu0 %v492_v0  ;;  %322 = vmatprep.mubr.msk.f32.mxu0 %vm493_vm0, %v494_v1  ;;  %v51_v3 = vld [vmem:[#allocation2 + $0x8] sm:$0xff]  ;;  %v52_v5 = vld [vmem:[#allocation2 + $0x10] sm:$0xff]  ;;  %v53_v6 = vld [vmem:[#allocation2 + $0x18] sm:$0xff]  ;;  %s495_s23 = smov [#allocation7]  }
  0x28   :  { %384 = vmatprep.subr.bf16.mxu1 %v492_v0  ;;  %357 = vmatprep.mubr.msk.f32.mxu1 %vm493_vm0, %v494_v1  ;;  %v361_v4 = vpack.c.bf16 %v51_v3, %v50_v2  ;;  %v144_v7 = vld [vmem:[#allocation5] sm:$0xff]  ;;  %v145_v8 = vld [vmem:[#allocation5 + $0x8] sm:$0xff]  ;;  %v364_v9 = vpack.c.bf16 %v53_v6, %v52_v5  ;;  %v146_v11 = vld [vmem:[#allocation5 + $0x10] sm:$0xff]  ;;  %s244_s24 = sshll.u32 %s495_s23, 4  ;;  %s245_s24 = int_to_ptr.vmem [resolvable:$true] %s244_s24 }
  0x29   :  { %v385_v10 = vpack.c.bf16 %v145_v8, %v144_v7  ;;  %v147_v12 = vld [vmem:[#allocation5 + $0x18] sm:$0xff]  ;;  %v54_v13 = vld [vmem:[#allocation2 + $0x20] sm:$0xff]  ;;  %v55_v14 = vld [vmem:[#allocation2 + $0x28] sm:$0xff]  ;;  %p465_p3 = scmp.lt.s32.totalorder %s245_s24, %s245_s24 }
  0x2a   :  { %362 = vmatpush3.bf16.xpose.msra.mxu0 %v361_v4  ;;  %v388_v15 = vpack.c.bf16 %v147_v12, %v146_v11  ;;  %v367_v16 = vpack.c.bf16 %v55_v14, %v54_v13  ;;  %v148_v17 = vld [vmem:[#allocation5 + $0x20] sm:$0xff]  ;;  %v149_v18 = vld [vmem:[#allocation5 + $0x28] sm:$0xff]  ;;  %v56_v19 = vld [vmem:[#allocation2 + $0x30] sm:$0xff] }
  0x2b   :  { %363 = vmatprep.subr.bf16.mxu0 %v492_v0  ;;  %386 = vmatpush3.bf16.xpose.msra.mxu1 %v385_v10  ;;  %v57_v20 = vld [vmem:[#allocation2 + $0x38] sm:$0xff]  ;;  %v391_v21 = vpack.c.bf16 %v149_v18, %v148_v17  ;;  %v150_v23 = vld [vmem:[#allocation5 + $0x30] sm:$0xff]  ;;  %v58_v25 = vld [vmem:[#allocation2 + $0x40] sm:$0xff] }
  0x2c   :  { %387 = vmatprep.subr.bf16.mxu1 %v492_v0  ;;  %v370_v22 = vpack.c.bf16 %v57_v20, %v56_v19  ;;  %v151_v24 = vld [vmem:[#allocation5 + $0x38] sm:$0xff]  ;;  %v59_v26 = vld [vmem:[#allocation2 + $0x48] sm:$0xff]  ;;  %v152_v29 = vld [vmem:[#allocation5 + $0x40] sm:$0xff] }
  0x2d   :  { %v394_v27 = vpack.c.bf16 %v151_v24, %v150_v23  ;;  %v373_v28 = vpack.c.bf16 %v59_v26, %v58_v25  ;;  %v153_v30 = vld [vmem:[#allocation5 + $0x48] sm:$0xff]  ;;  %v60_v31 = vld [vmem:[#allocation2 + $0x50] sm:$0xff]  ;;  %v61_v32 = vld [vmem:[#allocation2 + $0x58] sm:$0xff] }
  0x2e   :  { %v397_v33 = vpack.c.bf16 %v153_v30, %v152_v29  ;;  %v376_v34 = vpack.c.bf16 %v61_v32, %v60_v31  ;;  %v154_v35 = vld [vmem:[#allocation5 + $0x50] sm:$0xff]  ;;  %v155_v36 = vld [vmem:[#allocation5 + $0x58] sm:$0xff]  ;;  %v62_v37 = vld [vmem:[#allocation2 + $0x60] sm:$0xff] }
  0x2f   :  { %v63_v38 = vld [vmem:[#allocation2 + $0x68] sm:$0xff]  ;;  %v400_v39 = vpack.c.bf16 %v155_v36, %v154_v35  ;;  %v156_v41 = vld [vmem:[#allocation5 + $0x60] sm:$0xff]  ;;  %v64_v43 = vld [vmem:[#allocation2 + $0x70] sm:$0xff] }
  0x30   :  { %v379_v40 = vpack.c.bf16 %v63_v38, %v62_v37  ;;  %v157_v42 = vld [vmem:[#allocation5 + $0x68] sm:$0xff]  ;;  %v65_v44 = vld [vmem:[#allocation2 + $0x78] sm:$0xff]  ;;  %v158_v47 = vld [vmem:[#allocation5 + $0x70] sm:$0xff] }
  0x31   :  { %v403_v45 = vpack.c.bf16 %v157_v42, %v156_v41  ;;  %v382_v46 = vpack.c.bf16 %v65_v44, %v64_v43  ;;  %v159_v48 = vld [vmem:[#allocation5 + $0x78] sm:$0xff] }
  0x32   :  { %365 = vmatpush3.bf16.xpose.msra.mxu0 %v364_v9  ;;  %v406_v49 = vpack.c.bf16 %v159_v48, %v158_v47  ;;  %v49_v50 = vld [vmem:[%s587_s0] sm:$0xff]  ;;  %s460_s0 = scalar_lea.vmem %s245_s24, 128 }
  0x33   :  { %366 = vmatprep.subr.bf16.mxu0 %v492_v0  ;;  %389 = vmatpush3.bf16.xpose.msra.mxu1 %v388_v15  ;;  %v254_v51 = vld [vmem:[%s589_s2] ss:$0 sm:$0xff]  ;;  %p461_p2 = scmp.ne.s32.totalorder %s245_s24, %s460_s0  ;;  %p466_p4 = scmp.lt.s32.totalorder %s460_s0, %s460_s0 }
  0x34   :  { %390 = vmatprep.subr.bf16.mxu1 %v492_v0  ;;  %v255_v56 = vld [vmem:[%s591_s4] ss:$0 sm:$0xff] }
  0x35   :  { %p467_p5 = por %p466_p4, %p465_p3 }
  0x37   :  { %p468_p6 = pnand %p467_p5, %p461_p2 }
  0x3a   :  { %368 = vmatpush3.bf16.xpose.msra.mxu0 %v367_v16 }
  0x3b   :  { %369 = vmatprep.subr.bf16.mxu0 %v492_v0  ;;  %392 = vmatpush3.bf16.xpose.msra.mxu1 %v391_v21 }
  0x3c   :  { %393 = vmatprep.subr.bf16.mxu1 %v492_v0 }
  0x42   :  { %371 = vmatpush3.bf16.xpose.msra.mxu0 %v370_v22 }
  0x43   :  { %372 = vmatprep.subr.bf16.mxu0 %v492_v0  ;;  %395 = vmatpush3.bf16.xpose.msra.mxu1 %v394_v27 }
  0x44   :  { %396 = vmatprep.subr.bf16.mxu1 %v492_v0 }
  0x4a   :  { %374 = vmatpush3.bf16.xpose.msra.mxu0 %v373_v28 }
  0x4b   :  { %375 = vmatprep.subr.bf16.mxu0 %v492_v0  ;;  %398 = vmatpush3.bf16.xpose.msra.mxu1 %v397_v33 }
  0x4c   :  { %399 = vmatprep.subr.bf16.mxu1 %v492_v0 }
  0x52   :  { %377 = vmatpush3.bf16.xpose.msra.mxu0 %v376_v34 }
  0x53   :  { %378 = vmatprep.subr.bf16.mxu0 %v492_v0  ;;  %401 = vmatpush3.bf16.xpose.msra.mxu1 %v400_v39 }
  0x54   :  { %402 = vmatprep.subr.bf16.mxu1 %v492_v0 }
  0x5a   :  { %380 = vmatpush3.bf16.xpose.msra.mxu0 %v379_v40 }
  0x5b   :  { %381 = vmatprep.subr.bf16.mxu0 %v492_v0  ;;  %404 = vmatpush3.bf16.xpose.msra.mxu1 %v403_v45 }
  0x5c   :  { %405 = vmatprep.subr.bf16.mxu1 %v492_v0 }
  0x62   :  { %383 = vmatpush3.bf16.xpose.msra.mxu0 %v382_v46 }
  0x63   :  { %407 = vmatpush3.bf16.xpose.msra.mxu1 %v406_v49 }
  0x69   :  { %323 = vmatmul.mubr.f32.vlgmr.msra.gmra.mrb[0].mxu0 %v49_v50 }
 0x13c   :  { %v139_v52 = vpop.f32.mrb[0].mxu0 }
 0x13d   :  { %v140_v53 = vadd.f32 %v254_v51, %v139_v52  ;;  %v324_v54 = vpop.f32.mrb[1].mxu0 }
 0x13f   :  { %v143_v55 = vmax.f32 %v140_v53, 0.0 }
 0x141   :  { %358 = vmatmul.mubr.f32.vlgmr.msra.gmra.mrb[0].mxu1 %v143_v55 }
 0x214   :  { %v233_v57 = vpop.f32.mrb[0].mxu1 }
 0x215   :  { %v234_v58 = vadd.f32 %v255_v56, %v233_v57  ;;  %v359_v59 = vpop.f32.mrb[1].mxu1 }
 0x217   :  { %237 = vst [vmem:[#allocation7] sm:$0xff] %v234_v58 }
 0x218   :  { %471 = shalt.err (!%p468_p6)
}
 0x219   :  { %s472_s26 = scalar_lea.hbm %s592_s5, 128 }
 0x21a   :  { %p473_p7 = scmp.ne.s32.totalorder %s592_s5, %s472_s26  ;;  %p476_p8 = scmp.lt.u32.totalorder %s472_s26, %s592_s5 }
 0x21c   :  { %p478_p9 = pnand %p476_p8, %p473_p7 }
 0x21e   :  { %481 = shalt.err (!%p478_p9)
}
 0x21f   :  { %247 = dma.vmem_to_hbm [thread:$0]  %s245_s24, 128, %s592_s5, [#allocation4]  }
 0x220   :  { %486 = dma.done.wait [#allocation4], 128  }
 0x221   :  { %487 = vsyncadd [#allocation4], 4294967168 }
 0x222   :  { %251 = vsyncpa [#allocation3], 1 }
 0x223   :  { %252 = vsyncpa [#allocation6], 1 }
 0x224   :  { %253 = vsyncpa [#allocation4], 1 }

</bundles_post_ra>
